<compile_context>
chip_gen: v6e
topology: v6e:2x2x1
jax: 0.10.0
libtpu: 0.0.40
codegen_flags: <defaults>
</compile_context>

<pallas_src>
import jax
import jax.numpy as jnp
import numpy as np
from jax.experimental import pallas as pl
from jax.experimental.pallas import tpu as pltpu


# ----------------------------- config ---------------------------------------
class Config:
    embedding_depth = 48           # -> N1 = 16 "1o" vectors in the encoding
    num_decoder_points = 8         # P
    num_classes = 3                # C  (scalar out channels = P*(C+1))
    num_decoder_layers = 2         # hidden layers of the radial MLP
    decoder_norm_mode = "none"     # TODO(synk): MLP source not given; norm/dropout omitted (eval mode)
    decoder_dropout_probability = 0.0
    activation = "gelu"            # exact-erf GELU (torch default), see _gelu_exact


def _round_up(x, m):
    return -(-x // m) * m


# Exact-erf GELU: erf via Abramowitz & Stegun 7.1.26 (|err| <= 1.5e-7).
# Uses only exp / mul / add / div / select -> guaranteed Mosaic lowering.
def _gelu_exact(x):
    c1, c2, c3, c4, c5 = (0.254829592, -0.284496736, 1.421413741,
                          -1.453152027, 1.061405429)
    pcoef = 0.3275911
    z = x * np.float32(0.7071067811865476)          # x / sqrt(2)
    az = jnp.abs(z)
    t = 1.0 / (1.0 + pcoef * az)
    poly = ((((c5 * t + c4) * t + c3) * t + c2) * t + c1) * t
    erf_abs = 1.0 - poly * jnp.exp(-az * az)
    erf = jnp.where(z >= 0, erf_abs, -erf_abs)
    return 0.5 * x * (1.0 + erf)


# ----------------------------- kernel ---------------------------------------
def make_decoder_kernel(num_hidden):
    """Fused: plane-sum norms -> radial MLP -> lane-dense TP (0e x 1o -> 1o)."""

    def kernel(*refs):
        enc_ref, plane_sum_ref, w_in_ref, b_in_ref = refs[:4]
        hid_refs = refs[4:4 + 2 * num_hidden]
        (w_out_ref, b_out_ref, w3_ref, rep_ref, sel_ref,
         out_ref) = refs[4 + 2 * num_hidden:]

        enc = enc_ref[...]                                  # (bB, 3*N1) f32, plane-major [x|y|z]
        enc_bf = enc.astype(jnp.bfloat16)

        # per-vector L2 norms: r^2 = (enc*enc) @ PLANE_SUM (MXU), sqrt on EUP
        sq = (enc * enc).astype(jnp.bfloat16)
        r2 = jnp.dot(sq, plane_sum_ref[...], preferred_element_type=jnp.float32)
        r = jnp.sqrt(r2)                                    # (bB, N1) f32

        # radial MLP (bf16 operands, f32 accumulation, f32 GELU)
        h = _gelu_exact(jnp.dot(r.astype(jnp.bfloat16), w_in_ref[...],
                                preferred_element_type=jnp.float32)
                        + b_in_ref[...])
        for i in range(num_hidden):
            h = _gelu_exact(jnp.dot(h.astype(jnp.bfloat16), hid_refs[2 * i][...],
                                    preferred_element_type=jnp.float32)
                            + hid_refs[2 * i + 1][...])
        r_dec = (jnp.dot(h.astype(jnp.bfloat16), w_out_ref[...],
                         preferred_element_type=jnp.float32)
                 + b_out_ref[...])                          # (bB, N1) f32

        # TP 0e x 1o -> 1o, fully lane dense (no concats / narrow slices):
        #   a3[b, m*P*N1 + w*N1 + v]      = (1/N1) * sum_u r_dec[b,u] * W[w,u,v]
        #   enc_rep[b, m*P*N1 + w*N1 + v] = enc3[b, v, m]
        #   out[b, 3*w + m] = sum_v a3 * enc_rep   (0/1 block-sum selector, MXU)
        a3 = jnp.dot(r_dec.astype(jnp.bfloat16), w3_ref[...],
                     preferred_element_type=jnp.float32)    # (bB, 3*P*N1)
        enc_rep = jnp.dot(enc_bf, rep_ref[...],
                          preferred_element_type=jnp.float32)  # (bB, 3*P*N1)
        prod = (a3 * enc_rep).astype(jnp.bfloat16)
        out = jnp.dot(prod, sel_ref[...], preferred_element_type=jnp.float32)
        out_ref[...] = out.astype(out_ref.dtype)            # (bB, OUT_PAD), single dense store

    return kernel


# ----------------------------- wrapper ---------------------------------------
def equivariant_decoder_forward(encoding, params, cfg, num_graphs,
                                block_b_max=1024, out_dtype=jnp.float32,
                                trim_output=True):
    B = int(num_graphs)
    N1 = cfg.embedding_depth // 3
    P = cfg.num_decoder_points
    C = cfg.num_classes
    L = cfg.num_decoder_layers
    out_dim = 3 * P + P * (C + 1)
    OUT_PAD = _round_up(max(out_dim, 128), 128)             # lane-dense output width

    # plane-major encoding (B, 3*N1) = [x-plane | y-plane | z-plane]
    enc_pm = jnp.transpose(encoding.reshape(B, N1, 3), (0, 2, 1)).reshape(B, 3 * N1)

    # batch tiling: >=2 grid steps when B allows (v7x: 2 TensorCores), block_b a
    # multiple of 8 chosen to (nearly) divide B so the wrapper-side pad is
    # minimal or absent.
    num_blocks = max(2, pl.cdiv(B, block_b_max)) if B > 8 else 1
    block_b = min(block_b_max, max(8, _round_up(pl.cdiv(B, num_blocks), 8)))
    Bp = _round_up(B, block_b)
    if Bp != B:
        enc_pm = jnp.pad(enc_pm, ((0, Bp - B), (0, 0)))
    grid = (Bp // block_b,)

    f32, bf16 = jnp.float32, jnp.bfloat16

    # TP weights: (P,N1,N1) -> (N1, P*N1) with e3nn 1/N1 normalization folded,
    # tiled x3 over the xyz planes -> lane-dense (N1, 3*P*N1).
    w_tp_flat = (jnp.transpose(params["w_tp"], (1, 0, 2)).reshape(N1, P * N1)
                 * f32(1.0 / N1))
    w3 = jnp.tile(w_tp_flat, (1, 3)).astype(bf16)

    # Static 0/1 selectors (exact in bf16):
    #   REP       : encoding lane (m*N1+v) -> the P column groups of plane m
    #   SEL       : block-sums N1 lanes into output column 3*w+m; cols >= 3P
    #               stay zero (the 0e scalar block + lane padding)
    #   PLANE_SUM : sums the 3 planes of enc^2 for per-vector norms
    rep_np = np.zeros((3 * N1, 3 * P * N1), np.float32)
    sel_np = np.zeros((3 * P * N1, OUT_PAD), np.float32)
    eye = np.eye(N1, dtype=np.float32)
    for m in range(3):
        for w in range(P):
            base = m * P * N1 + w * N1
            rep_np[m * N1:(m + 1) * N1, base:base + N1] = eye
            sel_np[base:base + N1, 3 * w + m] = 1.0
    plane_np = np.concatenate([eye] * 3, axis=0)            # (3*N1, N1)
    rep = jnp.asarray(rep_np, bf16)
    sel = jnp.asarray(sel_np, bf16)
    plane_sum = jnp.asarray(plane_np, bf16)

    def w_bf(x):    # matmul weights as bf16 (cast once here, not per grid step)
        return jnp.asarray(x, bf16)

    def b_f32(x):   # biases stay f32 (added after the f32-accumulated dot)
        return jnp.asarray(x, f32).reshape(1, -1)

    hidden_flat = []
    for wh, bh in params["hidden"]:
        hidden_flat += [w_bf(wh), b_f32(bh)]
    weights = [plane_sum, w_bf(params["w_in"]), b_f32(params["b_in"]),
               *hidden_flat, w_bf(params["w_out"]), b_f32(params["b_out"]),
               w3, rep, sel]

    enc_spec = pl.BlockSpec((block_b, 3 * N1), lambda i: (i, 0))
    w_specs = [pl.BlockSpec(w.shape, lambda i: (0, 0)) for w in weights]  # VMEM-resident
    out_spec = pl.BlockSpec((block_b, OUT_PAD), lambda i: (i, 0))

    out = pl.pallas_call(
        make_decoder_kernel(L),
        out_shape=jax.ShapeDtypeStruct((Bp, OUT_PAD), out_dtype),
        grid=grid,
        in_specs=[enc_spec] + w_specs,
        out_specs=out_spec,
        compiler_params=pltpu.CompilerParams(
            dimension_semantics=("parallel",),
            vmem_limit_bytes=32 * 1024 * 1024),
    )(enc_pm, *weights)

    if not trim_output:
        return out                       # padded lane-dense (Bp, OUT_PAD) slab
    if Bp != B:
        out = out[:B]
    return out[:, :out_dim]


# ----------------------------- params / reference ----------------------------
def init_params(key, cfg):
    N1 = cfg.embedding_depth // 3
    F = cfg.embedding_depth
    P = cfg.num_decoder_points
    L = cfg.num_decoder_layers
    ks = jax.random.split(key, 2 * L + 6)
    params = {
        "w_in": jax.random.normal(ks[0], (N1, F), jnp.float32) / np.sqrt(N1),
        "b_in": jnp.zeros((1, F), jnp.float32),
        "w_out": jax.random.normal(ks[1], (F, N1), jnp.float32) / np.sqrt(F),
        "b_out": jnp.zeros((1, N1), jnp.float32),
        "w_tp": jax.random.normal(ks[2], (P, N1, N1), jnp.float32),
        "hidden": [],
    }
    for i in range(L):
        wh = jax.random.normal(ks[3 + 2 * i], (F, F), jnp.float32) / np.sqrt(F)
        bh = jnp.zeros((1, F), jnp.float32)
        params["hidden"].append((wh, bh))
    return params


def reference_forward(encoding, params, cfg, num_graphs):
    """Plain-JAX f32 reference of the same semantics (exact-erf GELU)."""
    B = num_graphs
    N1 = cfg.embedding_depth // 3
    P = cfg.num_decoder_points
    C = cfg.num_classes
    enc3 = encoding.reshape(B, N1, 3)
    r = jnp.linalg.norm(enc3, axis=-1)
    h = jax.nn.gelu(r @ params["w_in"] + params["b_in"], approximate=False)
    for wh, bh in params["hidden"]:
        h = jax.nn.gelu(h @ wh + bh, approximate=False)
    r_dec = h @ params["w_out"] + params["b_out"]
    vec = (1.0 / N1) * jnp.einsum("bu,wuv,bvm->bwm", r_dec, params["w_tp"], enc3)
    scalars = jnp.zeros((B, P * (C + 1)), jnp.float32)
    return jnp.concatenate([vec.reshape(B, 3 * P), scalars], axis=-1)


# ----------------------------- main ------------------------------------------
if __name__ == "__main__":
    cfg = Config()
    B = 2
    N1 = cfg.embedding_depth // 3

    key = jax.random.PRNGKey(0)
    k_enc, k_par = jax.random.split(key)
    encoding = jax.random.normal(k_enc, (B, 3 * N1), dtype=jnp.float32)
    params = init_params(k_par, cfg)

    out = equivariant_decoder_forward(encoding, params, cfg, B)
    out = jax.block_until_ready(out)

    ref = reference_forward(encoding, params, cfg, B)
    # Tolerance reflects bf16 MXU operands (with f32 accumulation) in the kernel.
    np.testing.assert_allclose(np.asarray(out), np.asarray(ref),
                               rtol=3e-2, atol=5e-2)

    print("KERNEL_OK")
</pallas_src>

<mosaic_0001>
module attributes {stable_mosaic.version = 11 : i64} {
  func.func @kernel(%arg0: i32, %arg1: memref<8x48xf32, #tpu.memory_space<vmem>>, %arg2: memref<48x16xbf16, #tpu.memory_space<vmem>>, %arg3: memref<16x48xbf16, #tpu.memory_space<vmem>>, %arg4: memref<1x48xf32, #tpu.memory_space<vmem>>, %arg5: memref<48x48xbf16, #tpu.memory_space<vmem>>, %arg6: memref<1x48xf32, #tpu.memory_space<vmem>>, %arg7: memref<48x48xbf16, #tpu.memory_space<vmem>>, %arg8: memref<1x48xf32, #tpu.memory_space<vmem>>, %arg9: memref<48x16xbf16, #tpu.memory_space<vmem>>, %arg10: memref<1x16xf32, #tpu.memory_space<vmem>>, %arg11: memref<16x384xbf16, #tpu.memory_space<vmem>>, %arg12: memref<48x384xbf16, #tpu.memory_space<vmem>>, %arg13: memref<384x128xbf16, #tpu.memory_space<vmem>>, %arg14: memref<8x128xf32, #tpu.memory_space<vmem>>) attributes {dimension_semantics = [#tpu.dimension_semantics<parallel>], iteration_bounds = array<i64: 1>, scalar_prefetch = 0 : i64, scratch_operands = 0 : i64, tpu.core_type = #tpu.core_type<tc>, window_params = [{transform_indices = @transform_0, window_bounds = array<i64: 8, 48>}, {pipeline_mode = #tpu.pipeline_mode<synchronous>, transform_indices = @transform_1, window_bounds = array<i64: 48, 16>}, {pipeline_mode = #tpu.pipeline_mode<synchronous>, transform_indices = @transform_2, window_bounds = array<i64: 16, 48>}, {pipeline_mode = #tpu.pipeline_mode<synchronous>, transform_indices = @transform_3, window_bounds = array<i64: 1, 48>}, {pipeline_mode = #tpu.pipeline_mode<synchronous>, transform_indices = @transform_4, window_bounds = array<i64: 48, 48>}, {pipeline_mode = #tpu.pipeline_mode<synchronous>, transform_indices = @transform_5, window_bounds = array<i64: 1, 48>}, {pipeline_mode = #tpu.pipeline_mode<synchronous>, transform_indices = @transform_6, window_bounds = array<i64: 48, 48>}, {pipeline_mode = #tpu.pipeline_mode<synchronous>, transform_indices = @transform_7, window_bounds = array<i64: 1, 48>}, {pipeline_mode = #tpu.pipeline_mode<synchronous>, transform_indices = @transform_8, window_bounds = array<i64: 48, 16>}, {pipeline_mode = #tpu.pipeline_mode<synchronous>, transform_indices = @transform_9, window_bounds = array<i64: 1, 16>}, {pipeline_mode = #tpu.pipeline_mode<synchronous>, transform_indices = @transform_10, window_bounds = array<i64: 16, 384>}, {pipeline_mode = #tpu.pipeline_mode<synchronous>, transform_indices = @transform_11, window_bounds = array<i64: 48, 384>}, {pipeline_mode = #tpu.pipeline_mode<synchronous>, transform_indices = @transform_12, window_bounds = array<i64: 384, 128>}, {transform_indices = @transform_13, window_bounds = array<i64: 8, 128>}]} {
    %c0 = arith.constant 0 : index
    %c0_0 = arith.constant 0 : index
    %0 = vector.load %arg1[%c0, %c0_0] : memref<8x48xf32, #tpu.memory_space<vmem>>, vector<8x48xf32>
    %1 = arith.truncf %0 : vector<8x48xf32> to vector<8x48xbf16>
    %2 = arith.mulf %0, %0 : vector<8x48xf32>
    %3 = arith.truncf %2 : vector<8x48xf32> to vector<8x48xbf16>
    %c0_1 = arith.constant 0 : index
    %c0_2 = arith.constant 0 : index
    %4 = vector.load %arg2[%c0_1, %c0_2] : memref<48x16xbf16, #tpu.memory_space<vmem>>, vector<48x16xbf16>
    %cst = arith.constant dense<0.000000e+00> : vector<8x16xf32>
    %5 = tpu.matmul %3, %4, %cst {dimension_numbers = #tpu.dot_dimension_numbers<[1], [0], [0], [1], [0, 0, 1, 1], [], []>} : vector<8x48xbf16>, vector<48x16xbf16>, vector<8x16xf32> -> vector<8x16xf32>
    %6 = math.sqrt %5 : vector<8x16xf32>
    %7 = arith.truncf %6 : vector<8x16xf32> to vector<8x16xbf16>
    %c0_3 = arith.constant 0 : index
    %c0_4 = arith.constant 0 : index
    %8 = vector.load %arg3[%c0_3, %c0_4] : memref<16x48xbf16, #tpu.memory_space<vmem>>, vector<16x48xbf16>
    %cst_5 = arith.constant dense<0.000000e+00> : vector<8x48xf32>
    %9 = tpu.matmul %7, %8, %cst_5 {dimension_numbers = #tpu.dot_dimension_numbers<[1], [0], [0], [1], [0, 0, 1, 1], [], []>} : vector<8x16xbf16>, vector<16x48xbf16>, vector<8x48xf32> -> vector<8x48xf32>
    %c0_6 = arith.constant 0 : index
    %c0_7 = arith.constant 0 : index
    %10 = vector.load %arg4[%c0_6, %c0_7] : memref<1x48xf32, #tpu.memory_space<vmem>>, vector<1x48xf32>
    %11 = vector.broadcast %10 : vector<1x48xf32> to vector<8x48xf32>
    %12 = arith.addf %9, %11 : vector<8x48xf32>
    %cst_8 = arith.constant 0.707106769 : f32
    %13 = vector.broadcast %cst_8 : f32 to vector<8x48xf32>
    %14 = arith.mulf %12, %13 : vector<8x48xf32>
    %15 = math.absf %14 : vector<8x48xf32>
    %cst_9 = arith.constant 0.327591091 : f32
    %16 = vector.broadcast %cst_9 : f32 to vector<8x48xf32>
    %17 = arith.mulf %16, %15 : vector<8x48xf32>
    %cst_10 = arith.constant 1.000000e+00 : f32
    %18 = vector.broadcast %cst_10 : f32 to vector<8x48xf32>
    %19 = arith.addf %18, %17 : vector<8x48xf32>
    %cst_11 = arith.constant 1.000000e+00 : f32
    %20 = vector.broadcast %cst_11 : f32 to vector<8x48xf32>
    %21 = arith.divf %20, %19 : vector<8x48xf32>
    %cst_12 = arith.constant 1.06140542 : f32
    %22 = vector.broadcast %cst_12 : f32 to vector<8x48xf32>
    %23 = arith.mulf %22, %21 : vector<8x48xf32>
    %cst_13 = arith.constant -1.45315206 : f32
    %24 = vector.broadcast %cst_13 : f32 to vector<8x48xf32>
    %25 = arith.addf %23, %24 : vector<8x48xf32>
    %26 = arith.mulf %25, %21 : vector<8x48xf32>
    %cst_14 = arith.constant 1.42141378 : f32
    %27 = vector.broadcast %cst_14 : f32 to vector<8x48xf32>
    %28 = arith.addf %26, %27 : vector<8x48xf32>
    %29 = arith.mulf %28, %21 : vector<8x48xf32>
    %cst_15 = arith.constant -0.284496725 : f32
    %30 = vector.broadcast %cst_15 : f32 to vector<8x48xf32>
    %31 = arith.addf %29, %30 : vector<8x48xf32>
    %32 = arith.mulf %31, %21 : vector<8x48xf32>
    %cst_16 = arith.constant 0.254829586 : f32
    %33 = vector.broadcast %cst_16 : f32 to vector<8x48xf32>
    %34 = arith.addf %32, %33 : vector<8x48xf32>
    %35 = arith.mulf %34, %21 : vector<8x48xf32>
    %cst_17 = arith.constant 0.000000e+00 : f32
    %36 = vector.broadcast %cst_17 : f32 to vector<8x48xf32>
    %37 = arith.subf %36, %15 : vector<8x48xf32>
    %38 = arith.mulf %37, %15 : vector<8x48xf32>
    %39 = math.exp %38 : vector<8x48xf32>
    %40 = arith.mulf %35, %39 : vector<8x48xf32>
    %cst_18 = arith.constant 1.000000e+00 : f32
    %41 = vector.broadcast %cst_18 : f32 to vector<8x48xf32>
    %42 = arith.subf %41, %40 : vector<8x48xf32>
    %cst_19 = arith.constant 0.000000e+00 : f32
    %43 = vector.broadcast %cst_19 : f32 to vector<8x48xf32>
    %44 = arith.cmpf oge, %14, %43 : vector<8x48xf32>
    %cst_20 = arith.constant 0.000000e+00 : f32
    %45 = vector.broadcast %cst_20 : f32 to vector<8x48xf32>
    %46 = arith.subf %45, %42 : vector<8x48xf32>
    %47 = arith.select %44, %42, %46 : vector<8x48xi1>, vector<8x48xf32>
    %cst_21 = arith.constant 5.000000e-01 : f32
    %48 = vector.broadcast %cst_21 : f32 to vector<8x48xf32>
    %49 = arith.mulf %48, %12 : vector<8x48xf32>
    %cst_22 = arith.constant 1.000000e+00 : f32
    %50 = vector.broadcast %cst_22 : f32 to vector<8x48xf32>
    %51 = arith.addf %50, %47 : vector<8x48xf32>
    %52 = arith.mulf %49, %51 : vector<8x48xf32>
    %53 = arith.truncf %52 : vector<8x48xf32> to vector<8x48xbf16>
    %c0_23 = arith.constant 0 : index
    %c0_24 = arith.constant 0 : index
    %54 = vector.load %arg5[%c0_23, %c0_24] : memref<48x48xbf16, #tpu.memory_space<vmem>>, vector<48x48xbf16>
    %cst_25 = arith.constant dense<0.000000e+00> : vector<8x48xf32>
    %55 = tpu.matmul %53, %54, %cst_25 {dimension_numbers = #tpu.dot_dimension_numbers<[1], [0], [0], [1], [0, 0, 1, 1], [], []>} : vector<8x48xbf16>, vector<48x48xbf16>, vector<8x48xf32> -> vector<8x48xf32>
    %c0_26 = arith.constant 0 : index
    %c0_27 = arith.constant 0 : index
    %56 = vector.load %arg6[%c0_26, %c0_27] : memref<1x48xf32, #tpu.memory_space<vmem>>, vector<1x48xf32>
    %57 = vector.broadcast %56 : vector<1x48xf32> to vector<8x48xf32>
    %58 = arith.addf %55, %57 : vector<8x48xf32>
    %cst_28 = arith.constant 0.707106769 : f32
    %59 = vector.broadcast %cst_28 : f32 to vector<8x48xf32>
    %60 = arith.mulf %58, %59 : vector<8x48xf32>
    %61 = math.absf %60 : vector<8x48xf32>
    %cst_29 = arith.constant 0.327591091 : f32
    %62 = vector.broadcast %cst_29 : f32 to vector<8x48xf32>
    %63 = arith.mulf %62, %61 : vector<8x48xf32>
    %cst_30 = arith.constant 1.000000e+00 : f32
    %64 = vector.broadcast %cst_30 : f32 to vector<8x48xf32>
    %65 = arith.addf %64, %63 : vector<8x48xf32>
    %cst_31 = arith.constant 1.000000e+00 : f32
    %66 = vector.broadcast %cst_31 : f32 to vector<8x48xf32>
    %67 = arith.divf %66, %65 : vector<8x48xf32>
    %cst_32 = arith.constant 1.06140542 : f32
    %68 = vector.broadcast %cst_32 : f32 to vector<8x48xf32>
    %69 = arith.mulf %68, %67 : vector<8x48xf32>
    %cst_33 = arith.constant -1.45315206 : f32
    %70 = vector.broadcast %cst_33 : f32 to vector<8x48xf32>
    %71 = arith.addf %69, %70 : vector<8x48xf32>
    %72 = arith.mulf %71, %67 : vector<8x48xf32>
    %cst_34 = arith.constant 1.42141378 : f32
    %73 = vector.broadcast %cst_34 : f32 to vector<8x48xf32>
    %74 = arith.addf %72, %73 : vector<8x48xf32>
    %75 = arith.mulf %74, %67 : vector<8x48xf32>
    %cst_35 = arith.constant -0.284496725 : f32
    %76 = vector.broadcast %cst_35 : f32 to vector<8x48xf32>
    %77 = arith.addf %75, %76 : vector<8x48xf32>
    %78 = arith.mulf %77, %67 : vector<8x48xf32>
    %cst_36 = arith.constant 0.254829586 : f32
    %79 = vector.broadcast %cst_36 : f32 to vector<8x48xf32>
    %80 = arith.addf %78, %79 : vector<8x48xf32>
    %81 = arith.mulf %80, %67 : vector<8x48xf32>
    %cst_37 = arith.constant 0.000000e+00 : f32
    %82 = vector.broadcast %cst_37 : f32 to vector<8x48xf32>
    %83 = arith.subf %82, %61 : vector<8x48xf32>
    %84 = arith.mulf %83, %61 : vector<8x48xf32>
    %85 = math.exp %84 : vector<8x48xf32>
    %86 = arith.mulf %81, %85 : vector<8x48xf32>
    %cst_38 = arith.constant 1.000000e+00 : f32
    %87 = vector.broadcast %cst_38 : f32 to vector<8x48xf32>
    %88 = arith.subf %87, %86 : vector<8x48xf32>
    %cst_39 = arith.constant 0.000000e+00 : f32
    %89 = vector.broadcast %cst_39 : f32 to vector<8x48xf32>
    %90 = arith.cmpf oge, %60, %89 : vector<8x48xf32>
    %cst_40 = arith.constant 0.000000e+00 : f32
    %91 = vector.broadcast %cst_40 : f32 to vector<8x48xf32>
    %92 = arith.subf %91, %88 : vector<8x48xf32>
    %93 = arith.select %90, %88, %92 : vector<8x48xi1>, vector<8x48xf32>
    %cst_41 = arith.constant 5.000000e-01 : f32
    %94 = vector.broadcast %cst_41 : f32 to vector<8x48xf32>
    %95 = arith.mulf %94, %58 : vector<8x48xf32>
    %cst_42 = arith.constant 1.000000e+00 : f32
    %96 = vector.broadcast %cst_42 : f32 to vector<8x48xf32>
    %97 = arith.addf %96, %93 : vector<8x48xf32>
    %98 = arith.mulf %95, %97 : vector<8x48xf32>
    %99 = arith.truncf %98 : vector<8x48xf32> to vector<8x48xbf16>
    %c0_43 = arith.constant 0 : index
    %c0_44 = arith.constant 0 : index
    %100 = vector.load %arg7[%c0_43, %c0_44] : memref<48x48xbf16, #tpu.memory_space<vmem>>, vector<48x48xbf16>
    %cst_45 = arith.constant dense<0.000000e+00> : vector<8x48xf32>
    %101 = tpu.matmul %99, %100, %cst_45 {dimension_numbers = #tpu.dot_dimension_numbers<[1], [0], [0], [1], [0, 0, 1, 1], [], []>} : vector<8x48xbf16>, vector<48x48xbf16>, vector<8x48xf32> -> vector<8x48xf32>
    %c0_46 = arith.constant 0 : index
    %c0_47 = arith.constant 0 : index
    %102 = vector.load %arg8[%c0_46, %c0_47] : memref<1x48xf32, #tpu.memory_space<vmem>>, vector<1x48xf32>
    %103 = vector.broadcast %102 : vector<1x48xf32> to vector<8x48xf32>
    %104 = arith.addf %101, %103 : vector<8x48xf32>
    %cst_48 = arith.constant 0.707106769 : f32
    %105 = vector.broadcast %cst_48 : f32 to vector<8x48xf32>
    %106 = arith.mulf %104, %105 : vector<8x48xf32>
    %107 = math.absf %106 : vector<8x48xf32>
    %cst_49 = arith.constant 0.327591091 : f32
    %108 = vector.broadcast %cst_49 : f32 to vector<8x48xf32>
    %109 = arith.mulf %108, %107 : vector<8x48xf32>
    %cst_50 = arith.constant 1.000000e+00 : f32
    %110 = vector.broadcast %cst_50 : f32 to vector<8x48xf32>
    %111 = arith.addf %110, %109 : vector<8x48xf32>
    %cst_51 = arith.constant 1.000000e+00 : f32
    %112 = vector.broadcast %cst_51 : f32 to vector<8x48xf32>
    %113 = arith.divf %112, %111 : vector<8x48xf32>
    %cst_52 = arith.constant 1.06140542 : f32
    %114 = vector.broadcast %cst_52 : f32 to vector<8x48xf32>
    %115 = arith.mulf %114, %113 : vector<8x48xf32>
    %cst_53 = arith.constant -1.45315206 : f32
    %116 = vector.broadcast %cst_53 : f32 to vector<8x48xf32>
    %117 = arith.addf %115, %116 : vector<8x48xf32>
    %118 = arith.mulf %117, %113 : vector<8x48xf32>
    %cst_54 = arith.constant 1.42141378 : f32
    %119 = vector.broadcast %cst_54 : f32 to vector<8x48xf32>
    %120 = arith.addf %118, %119 : vector<8x48xf32>
    %121 = arith.mulf %120, %113 : vector<8x48xf32>
    %cst_55 = arith.constant -0.284496725 : f32
    %122 = vector.broadcast %cst_55 : f32 to vector<8x48xf32>
    %123 = arith.addf %121, %122 : vector<8x48xf32>
    %124 = arith.mulf %123, %113 : vector<8x48xf32>
    %cst_56 = arith.constant 0.254829586 : f32
    %125 = vector.broadcast %cst_56 : f32 to vector<8x48xf32>
    %126 = arith.addf %124, %125 : vector<8x48xf32>
    %127 = arith.mulf %126, %113 : vector<8x48xf32>
    %cst_57 = arith.constant 0.000000e+00 : f32
    %128 = vector.broadcast %cst_57 : f32 to vector<8x48xf32>
    %129 = arith.subf %128, %107 : vector<8x48xf32>
    %130 = arith.mulf %129, %107 : vector<8x48xf32>
    %131 = math.exp %130 : vector<8x48xf32>
    %132 = arith.mulf %127, %131 : vector<8x48xf32>
    %cst_58 = arith.constant 1.000000e+00 : f32
    %133 = vector.broadcast %cst_58 : f32 to vector<8x48xf32>
    %134 = arith.subf %133, %132 : vector<8x48xf32>
    %cst_59 = arith.constant 0.000000e+00 : f32
    %135 = vector.broadcast %cst_59 : f32 to vector<8x48xf32>
    %136 = arith.cmpf oge, %106, %135 : vector<8x48xf32>
    %cst_60 = arith.constant 0.000000e+00 : f32
    %137 = vector.broadcast %cst_60 : f32 to vector<8x48xf32>
    %138 = arith.subf %137, %134 : vector<8x48xf32>
    %139 = arith.select %136, %134, %138 : vector<8x48xi1>, vector<8x48xf32>
    %cst_61 = arith.constant 5.000000e-01 : f32
    %140 = vector.broadcast %cst_61 : f32 to vector<8x48xf32>
    %141 = arith.mulf %140, %104 : vector<8x48xf32>
    %cst_62 = arith.constant 1.000000e+00 : f32
    %142 = vector.broadcast %cst_62 : f32 to vector<8x48xf32>
    %143 = arith.addf %142, %139 : vector<8x48xf32>
    %144 = arith.mulf %141, %143 : vector<8x48xf32>
    %145 = arith.truncf %144 : vector<8x48xf32> to vector<8x48xbf16>
    %c0_63 = arith.constant 0 : index
    %c0_64 = arith.constant 0 : index
    %146 = vector.load %arg9[%c0_63, %c0_64] : memref<48x16xbf16, #tpu.memory_space<vmem>>, vector<48x16xbf16>
    %cst_65 = arith.constant dense<0.000000e+00> : vector<8x16xf32>
    %147 = tpu.matmul %145, %146, %cst_65 {dimension_numbers = #tpu.dot_dimension_numbers<[1], [0], [0], [1], [0, 0, 1, 1], [], []>} : vector<8x48xbf16>, vector<48x16xbf16>, vector<8x16xf32> -> vector<8x16xf32>
    %c0_66 = arith.constant 0 : index
    %c0_67 = arith.constant 0 : index
    %148 = vector.load %arg10[%c0_66, %c0_67] : memref<1x16xf32, #tpu.memory_space<vmem>>, vector<1x16xf32>
    %149 = vector.broadcast %148 : vector<1x16xf32> to vector<8x16xf32>
    %150 = arith.addf %147, %149 : vector<8x16xf32>
    %151 = arith.truncf %150 : vector<8x16xf32> to vector<8x16xbf16>
    %c0_68 = arith.constant 0 : index
    %c0_69 = arith.constant 0 : index
    %152 = vector.load %arg11[%c0_68, %c0_69] : memref<16x384xbf16, #tpu.memory_space<vmem>>, vector<16x384xbf16>
    %cst_70 = arith.constant dense<0.000000e+00> : vector<8x384xf32>
    %153 = tpu.matmul %151, %152, %cst_70 {dimension_numbers = #tpu.dot_dimension_numbers<[1], [0], [0], [1], [0, 0, 1, 1], [], []>} : vector<8x16xbf16>, vector<16x384xbf16>, vector<8x384xf32> -> vector<8x384xf32>
    %c0_71 = arith.constant 0 : index
    %c0_72 = arith.constant 0 : index
    %154 = vector.load %arg12[%c0_71, %c0_72] : memref<48x384xbf16, #tpu.memory_space<vmem>>, vector<48x384xbf16>
    %cst_73 = arith.constant dense<0.000000e+00> : vector<8x384xf32>
    %155 = tpu.matmul %1, %154, %cst_73 {dimension_numbers = #tpu.dot_dimension_numbers<[1], [0], [0], [1], [0, 0, 1, 1], [], []>} : vector<8x48xbf16>, vector<48x384xbf16>, vector<8x384xf32> -> vector<8x384xf32>
    %156 = arith.mulf %153, %155 : vector<8x384xf32>
    %157 = arith.truncf %156 : vector<8x384xf32> to vector<8x384xbf16>
    %c0_74 = arith.constant 0 : index
    %c0_75 = arith.constant 0 : index
    %158 = vector.load %arg13[%c0_74, %c0_75] : memref<384x128xbf16, #tpu.memory_space<vmem>>, vector<384x128xbf16>
    %cst_76 = arith.constant dense<0.000000e+00> : vector<8x128xf32>
    %159 = tpu.matmul %157, %158, %cst_76 {dimension_numbers = #tpu.dot_dimension_numbers<[1], [0], [0], [1], [0, 0, 1, 1], [], []>} : vector<8x384xbf16>, vector<384x128xbf16>, vector<8x128xf32> -> vector<8x128xf32>
    %c0_77 = arith.constant 0 : index
    %c0_78 = arith.constant 0 : index
    %160 = vector.load %arg14[%c0_77, %c0_78] : memref<8x128xf32, #tpu.memory_space<vmem>>, vector<8x128xf32>
    tpu.vector_store %arg14[%c0_77, %c0_78], %159 {strides = array<i32>} : memref<8x128xf32, #tpu.memory_space<vmem>>, vector<8x128xf32>,
    return
  }
  func.func @transform_0(%arg0: i32) -> (i32, i32) {
    %c0_i32 = arith.constant 0 : i32
    %c0_i32_0 = arith.constant 0 : i32
    return %arg0, %c0_i32 : i32, i32
  }
  func.func @transform_1(%arg0: i32) -> (i32, i32) {
    %c0_i32 = arith.constant 0 : i32
    %c0_i32_0 = arith.constant 0 : i32
    %c0_i32_1 = arith.constant 0 : i32
    return %c0_i32, %c0_i32_0 : i32, i32
  }
  func.func @transform_2(%arg0: i32) -> (i32, i32) {
    %c0_i32 = arith.constant 0 : i32
    %c0_i32_0 = arith.constant 0 : i32
    %c0_i32_1 = arith.constant 0 : i32
    return %c0_i32, %c0_i32_0 : i32, i32
  }
  func.func @transform_3(%arg0: i32) -> (i32, i32) {
    %c0_i32 = arith.constant 0 : i32
    %c0_i32_0 = arith.constant 0 : i32
    %c0_i32_1 = arith.constant 0 : i32
    return %c0_i32, %c0_i32_0 : i32, i32
  }
  func.func @transform_4(%arg0: i32) -> (i32, i32) {
    %c0_i32 = arith.constant 0 : i32
    %c0_i32_0 = arith.constant 0 : i32
    %c0_i32_1 = arith.constant 0 : i32
    return %c0_i32, %c0_i32_0 : i32, i32
  }
  func.func @transform_5(%arg0: i32) -> (i32, i32) {
    %c0_i32 = arith.constant 0 : i32
    %c0_i32_0 = arith.constant 0 : i32
    %c0_i32_1 = arith.constant 0 : i32
    return %c0_i32, %c0_i32_0 : i32, i32
  }
  func.func @transform_6(%arg0: i32) -> (i32, i32) {
    %c0_i32 = arith.constant 0 : i32
    %c0_i32_0 = arith.constant 0 : i32
    %c0_i32_1 = arith.constant 0 : i32
    return %c0_i32, %c0_i32_0 : i32, i32
  }
  func.func @transform_7(%arg0: i32) -> (i32, i32) {
    %c0_i32 = arith.constant 0 : i32
    %c0_i32_0 = arith.constant 0 : i32
    %c0_i32_1 = arith.constant 0 : i32
    return %c0_i32, %c0_i32_0 : i32, i32
  }
  func.func @transform_8(%arg0: i32) -> (i32, i32) {
    %c0_i32 = arith.constant 0 : i32
    %c0_i32_0 = arith.constant 0 : i32
    %c0_i32_1 = arith.constant 0 : i32
    return %c0_i32, %c0_i32_0 : i32, i32
  }
  func.func @transform_9(%arg0: i32) -> (i32, i32) {
    %c0_i32 = arith.constant 0 : i32
    %c0_i32_0 = arith.constant 0 : i32
    %c0_i32_1 = arith.constant 0 : i32
    return %c0_i32, %c0_i32_0 : i32, i32
  }
  func.func @transform_10(%arg0: i32) -> (i32, i32) {
    %c0_i32 = arith.constant 0 : i32
    %c0_i32_0 = arith.constant 0 : i32
    %c0_i32_1 = arith.constant 0 : i32
    return %c0_i32, %c0_i32_0 : i32, i32
  }
  func.func @transform_11(%arg0: i32) -> (i32, i32) {
    %c0_i32 = arith.constant 0 : i32
    %c0_i32_0 = arith.constant 0 : i32
    %c0_i32_1 = arith.constant 0 : i32
    return %c0_i32, %c0_i32_0 : i32, i32
  }
  func.func @transform_12(%arg0: i32) -> (i32, i32) {
    %c0_i32 = arith.constant 0 : i32
    %c0_i32_0 = arith.constant 0 : i32
    %c0_i32_1 = arith.constant 0 : i32
    return %c0_i32, %c0_i32_0 : i32, i32
  }
  func.func @transform_13(%arg0: i32) -> (i32, i32) {
    %c0_i32 = arith.constant 0 : i32
    %c0_i32_0 = arith.constant 0 : i32
    return %arg0, %c0_i32 : i32, i32
  }
}

</mosaic_0001>

<bundles_post_ra>
// kernel: tpu_custom_call.1
= control target key start
LH: loop header
LB: loop body
LE: loop exit
PB: predicated region body
PF: predicated region fallthrough
CT: control target
= control target key end

     0   :  { %18 = vsyncpa [#allocation3], 0  ;;  %s1740_s0 = inlined_call_operand.vmem [shape: f32[8,48], index: 0, kind: input, shape index: {}]   ;;  %s1741_s1 = inlined_call_operand.vmem [shape: bf16[48,16], index: 1, kind: input, shape index: {}]   ;;  %s1742_s2 = inlined_call_operand.hbm [shape: bf16[16,48], index: 2, kind: input, shape index: {}]   ;;  %s1743_s3 = inlined_call_operand.vmem [shape: f32[1,48], index: 3, kind: input, shape index: {}]   ;;  %s1744_s4 = inlined_call_operand.hbm [shape: bf16[48,48], index: 4, kind: input, shape index: {}]   ;;  %s1745_s5 = inlined_call_operand.vmem [shape: f32[1,48], index: 5, kind: input, shape index: {}]   ;;  %s1746_s6 = inlined_call_operand.hbm [shape: bf16[48,48], index: 6, kind: input, shape index: {}]   ;;  %s1747_s7 = inlined_call_operand.vmem [shape: f32[1,48], index: 7, kind: input, shape index: {}]   ;;  %s1748_s8 = inlined_call_operand.vmem [shape: bf16[48,16], index: 8, kind: input, shape index: {}]   ;;  %s1749_s9 = inlined_call_operand.vmem [shape: f32[1,16], index: 9, kind: input, shape index: {}]   ;;  %s1750_s10 = inlined_call_operand.hbm [shape: bf16[16,384], index: 10, kind: input, shape index: {}]   ;;  %s1751_s11 = inlined_call_operand.vmem [shape: bf16[48,384], index: 11, kind: input, shape index: {}]   ;;  %s1752_s12 = inlined_call_operand.hbm [shape: bf16[384,128], index: 12, kind: input, shape index: {}]   ;;  %s1753_s13 = inlined_call_operand.hbm [shape: f32[8,128], index: 13, kind: output, shape index: {}]  }
   0x1   :  { %19 = vsyncpa [#allocation6], 0 }
   0x2   :  { %20 = vsyncpa [#allocation9], 0 }
   0x3   :  { %21 = vsyncpa [#allocation4], 0  ;;  %s1511_s25 = smov [#allocation5]   ;;  %s1512_s27 = smov [#allocation8]  }
   0x4   :  { %s45_s26 = sshll.u32 %s1511_s25, 4  ;;  %s77_s28 = sshll.u32 %s1512_s27, 4  ;;  %s46_s26 = int_to_ptr.vmem [resolvable:$true] %s45_s26  ;;  %s78_s28 = int_to_ptr.vmem [resolvable:$true] %s77_s28 }
   0x5   :  { %s1391_s29 = scalar_lea.vmem %s46_s26, 384  ;;  %p1396_p1 = scmp.lt.s32.totalorder %s46_s26, %s46_s26 }
   0x6   :  { %p1392_p0 = scmp.ne.s32.totalorder %s46_s26, %s1391_s29  ;;  %p1397_p2 = scmp.lt.s32.totalorder %s1391_s29, %s1391_s29 }
   0x8   :  { %p1398_p3 = por %p1397_p2, %p1396_p1 }
   0xa   :  { %p1399_p4 = pnand %p1398_p3, %p1392_p0 }
   0xc   :  { %1402 = shalt.err (!%p1399_p4)
}
   0xd   :  { %s1513_s30 = smov 64   ;;  %s1514_s14 = smov 4  }
   0xe   :  { %51 = dma.hbm_to_vmem [thread:$0]  %s1744_s4, 384, %s46_s26, [#allocation6], %s1513_s30, %s1513_s30, %s1514_s14  }
   0xf   :  { %s1411_s17 = scalar_lea.vmem %s78_s28, 384  ;;  %p1416_p6 = scmp.lt.s32.totalorder %s78_s28, %s78_s28 }
  0x10   :  { %p1412_p5 = scmp.ne.s32.totalorder %s78_s28, %s1411_s17  ;;  %p1417_p7 = scmp.lt.s32.totalorder %s1411_s17, %s1411_s17 }
  0x12   :  { %p1418_p8 = por %p1417_p7, %p1416_p6 }
  0x14   :  { %p1419_p9 = pnand %p1418_p8, %p1412_p5 }
  0x16   :  { %1422 = shalt.err (!%p1419_p9)
}
  0x17   :  { %s1515_s18 = smov 192   ;;  %s1516_s19 = smov 12  }
  0x18   :  { %83 = dma.hbm_to_vmem [thread:$0]  %s1750_s10, 384, %s78_s28, [#allocation9], %s1515_s18, %s1515_s18, %s1516_s19  }
  0x19   :  { %s1517_s22 = smov [#allocation2]   ;;  %s1518_s24 = smov [#allocation7]  }
  0x1a   :  { %s31_s23 = sshll.u32 %s1517_s22, 4  ;;  %s59_s25 = sshll.u32 %s1518_s24, 4  ;;  %s32_s23 = int_to_ptr.vmem [resolvable:$true] %s31_s23  ;;  %s60_s25 = int_to_ptr.vmem [resolvable:$true] %s59_s25 }
  0x1b   :  { %s1431_s4 = scalar_lea.vmem %s32_s23, 128  ;;  %p1436_p11 = scmp.lt.s32.totalorder %s32_s23, %s32_s23 }
  0x1c   :  { %p1432_p10 = scmp.ne.s32.totalorder %s32_s23, %s1431_s4  ;;  %p1437_p12 = scmp.lt.s32.totalorder %s1431_s4, %s1431_s4 }
  0x1e   :  { %p1438_p13 = por %p1437_p12, %p1436_p11 }
  0x20   :  { %p1439_p0 = pnand %p1438_p13, %p1432_p10 }
  0x22   :  { %1442 = shalt.err (!%p1439_p0)
}
  0x23   :  { %37 = dma.hbm_to_vmem [thread:$0]  %s1742_s2, 128, %s32_s23, [#allocation3], %s1513_s30, %s1513_s30, %s1514_s14  }
  0x24   :  { %s1451_s10 = scalar_lea.vmem %s60_s25, 384  ;;  %p1456_p2 = scmp.lt.s32.totalorder %s60_s25, %s60_s25 }
  0x25   :  { %p1452_p1 = scmp.ne.s32.totalorder %s60_s25, %s1451_s10  ;;  %p1457_p3 = scmp.lt.s32.totalorder %s1451_s10, %s1451_s10 }
  0x27   :  { %p1458_p4 = por %p1457_p3, %p1456_p2 }
  0x29   :  { %p1459_p5 = pnand %p1458_p4, %p1452_p1 }
  0x2b   :  { %1462 = shalt.err (!%p1459_p5)
}
  0x2c   :  { %65 = dma.hbm_to_vmem [thread:$0]  %s1746_s6, 384, %s60_s25, [#allocation6], %s1513_s30, %s1513_s30, %s1514_s14  }
  0x2d   :  { %s1519_s15 = smov [#allocation10]  }
  0x2e   :  { %s91_s16 = sshll.u32 %s1519_s15, 4  ;;  %s92_s16 = int_to_ptr.vmem [resolvable:$true] %s91_s16 }
  0x2f   :  { %s1471_s17 = scalar_lea.vmem %s92_s16, 3072  ;;  %p1476_p7 = scmp.lt.s32.totalorder %s92_s16, %s92_s16 }
  0x30   :  { %p1472_p6 = scmp.ne.s32.totalorder %s92_s16, %s1471_s17  ;;  %p1477_p8 = scmp.lt.s32.totalorder %s1471_s17, %s1471_s17 }
  0x32   :  { %p1478_p9 = por %p1477_p8, %p1476_p7 }
  0x34   :  { %p1479_p10 = pnand %p1478_p9, %p1472_p6 }
  0x36   :  { %1482 = shalt.err (!%p1479_p10)
}
  0x37   :  { %97 = dma.hbm_to_vmem [thread:$0]  %s1752_s12, 3072, %s92_s16, [#allocation9], %s1513_s30, %s1513_s30, %s1514_s14  }
  0x38   :  { %1503 = dma.done.wait [#allocation3], 128  }
  0x39   :  { %1504 = vsyncadd [#allocation3], 4294967168 }
  0x3a   :  { %1505 = dma.done.wait [#allocation6], 768  }
  0x3b   :  { %1506 = vsyncadd [#allocation6], 4294966528 }
  0x3c   :  { %1507 = dma.done.wait [#allocation9], 3456  }
  0x3d   :  { %1508 = vsyncadd [#allocation9], 4294963840  ;;  %v1520_v0 = vmov 0.0   ;;  %vm1521_vm0 = vmmov 0   ;;  %v1316_v1 = vld [vmem:[%s1741_s1 + $0x10] sm:$0xff]   ;;  %v1317_v2 = vld [vmem:[%s1741_s1 + $0x8] sm:$0xff]  }
  0x3e   :  { %1221 = vmatprep.subr.bf16.mxu0 %v1520_v0  ;;  %1227 = vmatprep.mubr.msk.bf16.mxu0 %vm1521_vm0, %v1520_v0  ;;  %v1637_v3 = vld [vmem:[%s1740_s0] sm:$0xff]  ;;  %vm142_vm1 = vcmask 392192   ;;  %vm209_vm4 = vcmask 130048   ;;  %v1320_v18 = vld [vmem:[#allocation5 + $0x10] sm:$0xff]   ;;  %v1321_v19 = vld [vmem:[#allocation5 + $0x8] sm:$0xff]  }
  0x3f   :  { %1231 = vmatprep.subr.bf16.mxu1 %v1520_v0  ;;  %1233 = vmatprep.mubr.msk.bf16.mxu1 %vm1521_vm0, %v1520_v0  ;;  %v1318_v4 = vld [vmem:[%s1741_s1] sm:$0xff]   ;;  %v116_v5 = vmul.f32 %v1637_v3, %v1637_v3  ;;  %v1322_v20 = vld [vmem:[#allocation5] sm:$0xff]   ;;  %v1323_v53 = vld [vmem:[#allocation7 + $0x10] sm:$0xff]  }
  0x40   :  { %1222 = vmatpush3.bf16.msra.mxu0 %v1316_v1  ;;  %v1319_v7 = vld [vmem:[#allocation2] sm:$0xff]   ;;  %v1324_v54 = vld [vmem:[#allocation7 + $0x8] sm:$0xff]  }
  0x41   :  { %1223 = vmatprep.subr.bf16.mxu0 %v1520_v0  ;;  %v117_v6 = vpack.c.bf16 %v116_v5, %v116_v5  ;;  %1232 = vmatpush3.bf16.msra.mxu1 %v1319_v7  ;;  %v1108_v21 = vld [vmem:[%s1743_s3] ss:$0 sm:$0xff] }
  0x42   :  { %1237 = vmatprep.subr.bf16.mxu1 %v1520_v0  ;;  %v1325_v55 = vld [vmem:[#allocation7] sm:$0xff]  }
  0x43   :  { %v1111_v56 = vld [vmem:[%s1745_s5] ss:$0 sm:$0xff] }
  0x44   :  { %1224 = vmatpush3.bf16.msra.mxu0 %v1317_v2 }
  0x45   :  { %1225 = vmatprep.subr.bf16.mxu0 %v1520_v0 }
  0x48   :  { %1226 = vmatpush3.bf16.msra.mxu0 %v1318_v4 }
  0x49   :  { %1247 = vmatprep.subr.bf16.mxu0 %v1520_v0 }
  0x4b   :  { %1228 = vmatmul.mubr.msk.bf16.vlgmr.msra.gmra.mxu0 %vm142_vm1, %v117_v6 }
  0x4c   :  { %1253 = vmatprep.mubr.msk.bf16.mxu0 %vm1521_vm0, %v1520_v0  ;;  %1248 = vmatpush3.bf16.msra.mxu0 %v1323_v53 }
  0x4d   :  { %1249 = vmatprep.subr.bf16.mxu0 %v1520_v0 }
  0x50   :  { %1250 = vmatpush3.bf16.msra.mxu0 %v1324_v54 }
  0x51   :  { %1251 = vmatprep.subr.bf16.mxu0 %v1520_v0 }
  0x54   :  { %1252 = vmatpush3.bf16.msra.mxu0 %v1325_v55 }
 0x10b   :  { %v180_v8 = vpop.f32.mrf.mxu0 }
 0x10c   :  { %1369 = vrsqrt.f32 %v180_v8  ;;  %vm188_vm2 = vcmp.eq.f32.partialorder %v180_v8, inf  ;;  %v191_v14 = vand.u32 2147483648, %v180_v8  ;;  %vm190_vm3 = vcmp.eq.f32.partialorder %v180_v8, 0.0 }
 0x10d   :  { %v1229_v9 = vpop.f32.mrf.mxu0 }
 0x10f   :  { %v183_v10 = vpop.f32.mrf.mxu0 }
 0x111   :  { %v1230_v11 = vpop.f32.mrf.mxu0 }
 0x119   :  { %v1370_v12 = vpop.eup %1369 }
 0x11a   :  { %v187_v13 = vmul.f32 %v1370_v12, %v180_v8 }
 0x11c   :  { %v189_v15 = vsel %vm188_vm2, %v180_v8, %v187_v13 }
 0x11d   :  { %v192_v16 = vsel %vm190_vm3, %v191_v14, %v189_v15 }
 0x11e   :  { %v193_v17 = vpack.c.bf16 %v192_v16, %v192_v16 }
 0x120   :  { %1234 = vmatmul.mubr.msk.bf16.vlgmr.msra.gmra.mxu1 %vm209_vm4, %v193_v17 }
 0x121   :  { %1243 = vmatprep.mubr.msk.bf16.mxu1 %vm1521_vm0, %v1520_v0  ;;  %1238 = vmatpush3.bf16.msra.mxu1 %v1320_v18 }
 0x122   :  { %1239 = vmatprep.subr.bf16.mxu1 %v1520_v0 }
 0x125   :  { %1240 = vmatpush3.bf16.msra.mxu1 %v1321_v19 }
 0x126   :  { %1241 = vmatprep.subr.bf16.mxu1 %v1520_v0 }
 0x129   :  { %1242 = vmatpush3.bf16.msra.mxu1 %v1322_v20 }
 0x12a   :  { %1257 = vmatprep.subr.bf16.mxu1 %v1520_v0 }
 0x1e0   :  { %v247_v22 = vpop.f32.mrf.mxu1 }
 0x1e1   :  { %v248_v23 = vadd.f32 %v1108_v21, %v247_v22 }
 0x1e2   :  { %v1235_v24 = vpop.f32.mrf.mxu1 }
 0x1e3   :  { %v253_v25 = vmul.f32 0.70710677, %v248_v23  ;;  %v277_v49 = vmul.f32 0.5, %v248_v23 }
 0x1e4   :  { %v250_v26 = vpop.f32.mrf.mxu1 }
 0x1e5   :  { %v254_v27 = vand.u32 2147483647, %v253_v25  ;;  %vm274_vm5 = vcmp.ge.f32.partialorder %v253_v25, 0.0  ;;  %v1326_v26 = vld [vmem:[%s1748_s8 + $0x10] sm:$0xff]  }
 0x1e6   :  { %v1236_v28 = vpop.f32.mrf.mxu1 }
 0x1e7   :  { %v255_v29 = vmul.f32 0.3275911, %v254_v27  ;;  %v268_v31 = vsub.f32 0.0, %v254_v27  ;;  %v1328_v28 = vld [vmem:[%s1748_s8] sm:$0xff]  }
 0x1e9   :  { %v256_v30 = vadd.f32 1.0, %v255_v29  ;;  %v269_v32 = vmul.f32 %v268_v31, %v254_v27  ;;  %v1327_v27 = vld [vmem:[%s1748_s8 + $0x8] sm:$0xff]   ;;  %v1329_v29 = vld [vmem:[#allocation8] ss:$12 sps:$4 sm:$0xff]   ;;  %v1116_v31 = vld [vmem:[%s1747_s7] ss:$0 sm:$0xff] }
 0x1eb   :  { %1371 = vrcp.f32 %v256_v30  ;;  %v270_v35 = vmul.f32 1.442695, %v269_v32  ;;  %v1331_v30 = vld [vmem:[#allocation8 + $0x4] ss:$12 sps:$4 sm:$0xff]  }
 0x1ec   :  { %597 = vmatprep.subr.bf16.mxu0 %v1331_v30  ;;  %v1356_v30 = vld [vmem:[#allocation10 + $0x20] sm:$0xff]  }
 0x1ed   :  { %1373 = vpow2.f32 %v270_v35 }
 0x1f8   :  { %v1372_v33 = vpop.eup %1371 }
 0x1f9   :  { %v259_v34 = vmul.f32 1.0614054, %v1372_v33 }
 0x1fa   :  { %v1374_v44 = vpop.eup %1373 }
 0x1fb   :  { %v260_v36 = vadd.f32 -1.4531521, %v259_v34 }
 0x1fd   :  { %v261_v37 = vmul.f32 %v1372_v33, %v260_v36 }
 0x1ff   :  { %v262_v38 = vadd.f32 1.4214138, %v261_v37 }
 0x201   :  { %v263_v39 = vmul.f32 %v1372_v33, %v262_v38 }
 0x203   :  { %v264_v40 = vadd.f32 -0.28449672, %v263_v39 }
 0x205   :  { %v265_v41 = vmul.f32 %v1372_v33, %v264_v40 }
 0x207   :  { %v266_v42 = vadd.f32 0.2548296, %v265_v41 }
 0x209   :  { %v267_v43 = vmul.f32 %v1372_v33, %v266_v42 }
 0x20b   :  { %v272_v45 = vmul.f32 %v1374_v44, %v267_v43 }
 0x20d   :  { %v273_v46 = vsub.f32 1.0, %v272_v45 }
 0x20f   :  { %v275_v47 = vsub.f32 0.0, %v273_v46 }
 0x211   :  { %v276_v48 = vsel %vm274_vm5, %v273_v46, %v275_v47 }
 0x212   :  { %v278_v50 = vadd.f32 1.0, %v276_v48 }
 0x214   :  { %v279_v51 = vmul.f32 %v278_v50, %v277_v49 }
 0x216   :  { %v280_v52 = vpack.c.bf16 %v279_v51, %v279_v51 }
 0x218   :  { %1244 = vmatmul.mubr.msk.bf16.vlgmr.msra.gmra.mxu1 %vm142_vm1, %v280_v52 }
 0x219   :  { %1263 = vmatprep.mubr.msk.bf16.mxu1 %vm1521_vm0, %v1520_v0  ;;  %1258 = vmatpush3.bf16.msra.mxu1 %v1326_v26  ;;  %v1351_v26 = vld [vmem:[#allocation10 + $0xa8] sm:$0xff]  }
 0x21a   :  { %1259 = vmatprep.subr.bf16.mxu1 %v1520_v0 }
 0x21d   :  { %1260 = vmatpush3.bf16.msra.mxu1 %v1327_v27  ;;  %v1353_v27 = vld [vmem:[#allocation10 + $0x28] sm:$0xff]  }
 0x21e   :  { %1261 = vmatprep.subr.bf16.mxu1 %v1520_v0 }
 0x221   :  { %1262 = vmatpush3.bf16.msra.mxu1 %v1328_v28  ;;  %v1355_v28 = vld [vmem:[#allocation10 + $0x60] sm:$0xff]  }
 0x222   :  { %1267 = vmatprep.subr.bf16.mxu1 %v1520_v0 }
 0x2d8   :  { %v349_v57 = vpop.f32.mrf.mxu1 }
 0x2d9   :  { %v350_v58 = vadd.f32 %v1111_v56, %v349_v57 }
 0x2da   :  { %v1245_v59 = vpop.f32.mrf.mxu1 }
 0x2db   :  { %v355_v60 = vmul.f32 0.70710677, %v350_v58  ;;  %v379_v22 = vmul.f32 0.5, %v350_v58 }
 0x2dc   :  { %v352_v61 = vpop.f32.mrf.mxu1 }
 0x2dd   :  { %v356_v62 = vand.u32 2147483647, %v355_v60  ;;  %vm376_vm6 = vcmp.ge.f32.partialorder %v355_v60, 0.0 }
 0x2de   :  { %v1246_v63 = vpop.f32.mrf.mxu1 }
 0x2df   :  { %v357_v1 = vmul.f32 0.3275911, %v356_v62  ;;  %v370_v4 = vsub.f32 0.0, %v356_v62  ;;  %v1332_v63 = vld [vmem:[#allocation8 + $0x8] ss:$12 sps:$4 sm:$0xff]  }
 0x2e1   :  { %v358_v2 = vadd.f32 1.0, %v357_v1  ;;  %v371_v5 = vmul.f32 %v370_v4, %v356_v62  ;;  %v1335_v1 = vld [vmem:[%s1751_s11 + $0x34] ss:$12 sps:$4 sm:$0xff]  }
 0x2e2   :  { %v1121_v4 = vld [vmem:[%s1749_s9] ss:$0 sm:$0xff] }
 0x2e3   :  { %1375 = vrcp.f32 %v358_v2  ;;  %v372_v8 = vmul.f32 1.442695, %v371_v5  ;;  %v1522_v2 = vmov 0  }
 0x2e5   :  { %1377 = vpow2.f32 %v372_v8  ;;  %v1333_v8 = vld [vmem:[%s1751_s11 + $0x30] ss:$12 sps:$4 sm:$0xff]  }
 0x2f0   :  { %v1376_v6 = vpop.eup %1375 }
 0x2f1   :  { %v361_v7 = vmul.f32 1.0614054, %v1376_v6 }
 0x2f2   :  { %v1378_v17 = vpop.eup %1377 }
 0x2f3   :  { %v362_v9 = vadd.f32 -1.4531521, %v361_v7 }
 0x2f5   :  { %v363_v10 = vmul.f32 %v1376_v6, %v362_v9  ;;  %v1336_v9 = vld [vmem:[%s1751_s11 + $0x38] ss:$12 sps:$4 sm:$0xff]  }
 0x2f7   :  { %v364_v11 = vadd.f32 1.4214138, %v363_v10 }
 0x2f9   :  { %v365_v12 = vmul.f32 %v1376_v6, %v364_v11  ;;  %v1339_v11 = vld [vmem:[%s1751_s11 + $0x1c] ss:$12 sps:$4 sm:$0xff]  }
 0x2fb   :  { %v366_v13 = vadd.f32 -0.28449672, %v365_v12 }
 0x2fd   :  { %v367_v14 = vmul.f32 %v1376_v6, %v366_v13 }
 0x2ff   :  { %v368_v15 = vadd.f32 0.2548296, %v367_v14  ;;  %v1337_v14 = vld [vmem:[%s1751_s11 + $0x18] ss:$12 sps:$4 sm:$0xff]  }
 0x301   :  { %v369_v16 = vmul.f32 %v1376_v6, %v368_v15  ;;  %v1340_v15 = vld [vmem:[%s1751_s11 + $0x20] ss:$12 sps:$4 sm:$0xff]  }
 0x303   :  { %v374_v18 = vmul.f32 %v1378_v17, %v369_v16  ;;  %v1343_v16 = vld [vmem:[%s1751_s11 + $0x4] ss:$12 sps:$4 sm:$0xff]   ;;  %v1341_v17 = vld [vmem:[%s1751_s11] ss:$12 sps:$4 sm:$0xff]  }
 0x305   :  { %v375_v19 = vsub.f32 1.0, %v374_v18  ;;  %v1344_v18 = vld [vmem:[%s1751_s11 + $0x8] ss:$12 sps:$4 sm:$0xff]   ;;  %s1523_s11 = smov [#allocation11]  }
 0x306   :  { %s1093_s23 = sshll.u32 %s1523_s11, 4  ;;  %s1094_s23 = int_to_ptr.vmem [resolvable:$true] %s1093_s23 }
 0x307   :  { %v377_v20 = vsub.f32 0.0, %v375_v19  ;;  %s1483_s5 = scalar_lea.vmem %s1094_s23, 128  ;;  %p1488_p12 = scmp.lt.s32.totalorder %s1094_s23, %s1094_s23 }
 0x308   :  { %p1484_p11 = scmp.ne.s32.totalorder %s1094_s23, %s1483_s5  ;;  %p1489_p13 = scmp.lt.s32.totalorder %s1483_s5, %s1483_s5 }
 0x309   :  { %v378_v21 = vsel %vm376_vm6, %v375_v19, %v377_v20  ;;  %v1346_v19 = vld [vmem:[#allocation10 + $0x78] sm:$0xff]   ;;  %v115_v20 = vpack.c.bf16 %v1637_v3, %v1637_v3  ;;  %v1352_v3 = vld [vmem:[#allocation10 + $0x68] sm:$0xff]  }
 0x30a   :  { %v380_v23 = vadd.f32 1.0, %v378_v21  ;;  %v1345_v21 = vld [vmem:[#allocation10 + $0xb8] sm:$0xff]   ;;  %p1490_p0 = por %p1489_p13, %p1488_p12 }
 0x30c   :  { %v381_v24 = vmul.f32 %v380_v23, %v379_v22  ;;  %v1347_v22 = vld [vmem:[#allocation10 + $0x38] sm:$0xff]   ;;  %v1349_v23 = vld [vmem:[#allocation10 + $0x70] sm:$0xff]   ;;  %p1491_p1 = pnand %p1490_p0, %p1484_p11 }
 0x30e   :  { %v382_v25 = vpack.c.bf16 %v381_v24, %v381_v24  ;;  %v1348_v24 = vld [vmem:[#allocation10 + $0xb0] sm:$0xff]  }
 0x310   :  { %1254 = vmatmul.mubr.msk.bf16.vlgmr.msra.gmra.mxu0 %vm142_vm1, %v382_v25  ;;  %v1350_v25 = vld [vmem:[#allocation10 + $0x30] sm:$0xff]  }
 0x311   :  { %598 = vmatpush1.bf16.msra.mxu0 %v1329_v29  ;;  %615 = vmatprep.mubr.bf16.mxu0 %v1522_v2  ;;  %v1354_v29 = vld [vmem:[#allocation10 + $0xa0] sm:$0xff]  }
 0x312   :  { %737 = vmatprep.subr.bf16.mxu0 %v1335_v1 }
 0x3d0   :  { %v451_v32 = vpop.f32.mrf.mxu0 }
 0x3d1   :  { %v452_v33 = vadd.f32 %v1116_v31, %v451_v32  ;;  %v1357_v31 = vld [vmem:[#allocation10 + $0x98] sm:$0xff]  }
 0x3d2   :  { %v1255_v34 = vpop.f32.mrf.mxu0  ;;  %v1358_v32 = vld [vmem:[#allocation10 + $0x58] sm:$0xff]  }
 0x3d3   :  { %v457_v35 = vmul.f32 0.70710677, %v452_v33  ;;  %v481_v59 = vmul.f32 0.5, %v452_v33  ;;  %v1359_v33 = vld [vmem:[#allocation10 + $0x18] sm:$0xff]   ;;  %v1360_v34 = vld [vmem:[#allocation10 + $0x90] sm:$0xff]  }
 0x3d4   :  { %v454_v36 = vpop.f32.mrf.mxu0 }
 0x3d5   :  { %v458_v37 = vand.u32 2147483647, %v457_v35  ;;  %vm478_vm7 = vcmp.ge.f32.partialorder %v457_v35, 0.0  ;;  %v1361_v35 = vld [vmem:[#allocation10 + $0x50] sm:$0xff]  }
 0x3d6   :  { %v1256_v38 = vpop.f32.mrf.mxu0  ;;  %v1362_v36 = vld [vmem:[#allocation10 + $0x10] sm:$0xff]  }
 0x3d7   :  { %v459_v39 = vmul.f32 0.3275911, %v458_v37  ;;  %v472_v41 = vsub.f32 0.0, %v458_v37  ;;  %v1364_v38 = vld [vmem:[#allocation10 + $0x48] sm:$0xff]  }
 0x3d9   :  { %v460_v40 = vadd.f32 1.0, %v459_v39  ;;  %v473_v42 = vmul.f32 %v472_v41, %v458_v37  ;;  %v1363_v37 = vld [vmem:[#allocation10 + $0x88] sm:$0xff]   ;;  %v1367_v41 = vld [vmem:[#allocation10 + $0x40] sm:$0xff]  }
 0x3da   :  { %v1365_v39 = vld [vmem:[#allocation10 + $0x8] sm:$0xff]  }
 0x3db   :  { %1379 = vrcp.f32 %v460_v40  ;;  %v474_v45 = vmul.f32 1.442695, %v473_v42  ;;  %v1366_v40 = vld [vmem:[#allocation10 + $0x80] sm:$0xff]  }
 0x3dc   :  { %v1368_v42 = vld [vmem:[#allocation10] sm:$0xff]  }
 0x3dd   :  { %1381 = vpow2.f32 %v474_v45 }
 0x3e8   :  { %v1380_v43 = vpop.eup %1379 }
 0x3e9   :  { %v463_v44 = vmul.f32 1.0614054, %v1380_v43 }
 0x3ea   :  { %v1382_v54 = vpop.eup %1381 }
 0x3eb   :  { %v464_v46 = vadd.f32 -1.4531521, %v463_v44 }
 0x3ed   :  { %v465_v47 = vmul.f32 %v1380_v43, %v464_v46 }
 0x3ef   :  { %v466_v48 = vadd.f32 1.4214138, %v465_v47 }
 0x3f1   :  { %v467_v49 = vmul.f32 %v1380_v43, %v466_v48 }
 0x3f3   :  { %v468_v50 = vadd.f32 -0.28449672, %v467_v49 }
 0x3f5   :  { %v469_v51 = vmul.f32 %v1380_v43, %v468_v50 }
 0x3f7   :  { %v470_v52 = vadd.f32 0.2548296, %v469_v51 }
 0x3f9   :  { %v471_v53 = vmul.f32 %v1380_v43, %v470_v52 }
 0x3fb   :  { %v476_v55 = vmul.f32 %v1382_v54, %v471_v53 }
 0x3fd   :  { %v477_v56 = vsub.f32 1.0, %v476_v55 }
 0x3ff   :  { %v479_v57 = vsub.f32 0.0, %v477_v56 }
 0x401   :  { %v480_v58 = vsel %vm478_vm7, %v477_v56, %v479_v57 }
 0x402   :  { %v482_v60 = vadd.f32 1.0, %v480_v58 }
 0x404   :  { %v483_v61 = vmul.f32 %v482_v60, %v481_v59 }
 0x406   :  { %v484_v62 = vpack.c.bf16 %v483_v61, %v483_v61 }
 0x408   :  { %1264 = vmatmul.mubr.msk.bf16.vlgmr.msra.gmra.mxu1 %vm142_vm1, %v484_v62 }
 0x409   :  { %1269 = vmatprep.mubr.msk.bf16.mxu1 %vm1521_vm0, %v1520_v0  ;;  %1268 = vmatpush3.bf16.msra.mxu1 %v1332_v63 }
 0x40a   :  { %1273 = vmatprep.subr.bf16.mxu1 %v1520_v0 }
 0x4c8   :  { %v553_v5 = vpop.f32.mrf.mxu1 }
 0x4c9   :  { %v554_v6 = vadd.f32 %v1121_v4, %v553_v5 }
 0x4ca   :  { %v1265_v7 = vpop.f32.mrf.mxu1 }
 0x4cb   :  { %v559_v10 = vpack.c.bf16 %v554_v6, %v554_v6 }
 0x4cc   :  { %v556_v12 = vpop.f32.mrf.mxu1 }
 0x4cd   :  { %1129 = vmatmul.mubr.msk.bf16.vlgmr.msra.gmra.mxu0 %vm209_vm4, %v559_v10  ;;  %1270 = vmatmul.mubr.msk.bf16.vlgmr.msra.gmra.mxu1 %vm209_vm4, %v559_v10 }
 0x4ce   :  { %738 = vmatpush1.bf16.msra.mxu0 %v1333_v8  ;;  %1274 = vmatpush3.bf16.msra.mxu1 %v1336_v9  ;;  %v1266_v13 = vpop.f32.mrf.mxu1 }
 0x4cf   :  { %739 = vmatprep.subr.bf16.mxu0 %v1339_v11  ;;  %1275 = vmatprep.subr.bf16.mxu1 %v1520_v0 }
 0x4d0   :  { %759 = vmatprep.mubr.bf16.mxu0 %v1522_v2  ;;  %1279 = vmatprep.mubr.msk.bf16.mxu1 %vm1521_vm0, %v1520_v0 }
 0x4d2   :  { %740 = vmatpush1.bf16.msra.mxu0 %v1337_v14  ;;  %1276 = vmatpush3.bf16.msra.mxu1 %v1340_v15 }
 0x4d3   :  { %741 = vmatprep.subr.bf16.mxu0 %v1343_v16  ;;  %1277 = vmatprep.subr.bf16.mxu1 %v1520_v0 }
 0x4d6   :  { %742 = vmatpush1.bf16.msra.mxu0 %v1341_v17  ;;  %1278 = vmatpush3.bf16.msra.mxu1 %v1344_v18 }
 0x4d7   :  { %1283 = vmatprep.subr.bf16.mxu1 %v1520_v0  ;;  %1190 = vmatprep.subr.bf16.mxu0 %v1346_v19 }
 0x4d9   :  { %1140 = vmatmul.mubr.msk.bf16.vlgmr.msra.gmra.mxu0 %vm142_vm1, %v115_v20  ;;  %1280 = vmatmul.mubr.msk.bf16.vlgmr.msra.gmra.mxu1 %vm142_vm1, %v115_v20 }
 0x4da   :  { %1284 = vmatpush3.bf16.msra.mxu1 %v1345_v21  ;;  %1191 = vmatpush3.bf16.msra.mxu0 %v1347_v22 }
 0x4db   :  { %1285 = vmatprep.subr.bf16.mxu1 %v1520_v0  ;;  %1192 = vmatprep.subr.bf16.mxu0 %v1349_v23 }
 0x4dc   :  { %1299 = vmatprep.mubr.msk.bf16.mxu1 %vm1521_vm0, %v1520_v0 }
 0x4de   :  { %1286 = vmatpush3.bf16.msra.mxu1 %v1348_v24  ;;  %1193 = vmatpush3.bf16.msra.mxu0 %v1350_v25 }
 0x4df   :  { %1287 = vmatprep.subr.bf16.mxu1 %v1520_v0  ;;  %1194 = vmatprep.subr.bf16.mxu0 %v1352_v3 }
 0x4e2   :  { %1288 = vmatpush3.bf16.msra.mxu1 %v1351_v26  ;;  %1195 = vmatpush3.bf16.msra.mxu0 %v1353_v27 }
 0x4e3   :  { %1289 = vmatprep.subr.bf16.mxu1 %v1520_v0  ;;  %1196 = vmatprep.subr.bf16.mxu0 %v1355_v28 }
 0x4e6   :  { %1290 = vmatpush3.bf16.msra.mxu1 %v1354_v29  ;;  %1197 = vmatpush3.bf16.msra.mxu0 %v1356_v30 }
 0x4e7   :  { %1291 = vmatprep.subr.bf16.mxu1 %v1520_v0  ;;  %1198 = vmatprep.subr.bf16.mxu0 %v1358_v32 }
 0x4ea   :  { %1292 = vmatpush3.bf16.msra.mxu1 %v1357_v31  ;;  %1199 = vmatpush3.bf16.msra.mxu0 %v1359_v33 }
 0x4eb   :  { %1293 = vmatprep.subr.bf16.mxu1 %v1520_v0  ;;  %1200 = vmatprep.subr.bf16.mxu0 %v1361_v35 }
 0x4ee   :  { %1294 = vmatpush3.bf16.msra.mxu1 %v1360_v34  ;;  %1201 = vmatpush3.bf16.msra.mxu0 %v1362_v36 }
 0x4ef   :  { %1295 = vmatprep.subr.bf16.mxu1 %v1520_v0  ;;  %1202 = vmatprep.subr.bf16.mxu0 %v1364_v38 }
 0x4f2   :  { %1296 = vmatpush3.bf16.msra.mxu1 %v1363_v37  ;;  %1203 = vmatpush3.bf16.msra.mxu0 %v1365_v39 }
 0x4f3   :  { %1297 = vmatprep.subr.bf16.mxu1 %v1520_v0  ;;  %1204 = vmatprep.subr.bf16.mxu0 %v1367_v41 }
 0x4f6   :  { %1298 = vmatpush3.bf16.msra.mxu1 %v1366_v40  ;;  %1205 = vmatpush3.bf16.msra.mxu0 %v1368_v42 }
 0x58d   :  { %v617_v43 = vpop.f32.mrf.mxu0  ;;  %v658_v44 = vpop.f32.mrf.mxu1 }
 0x58f   :  { %v619_v45 = vpop.f32.mrf.mxu0  ;;  %v1271_v46 = vpop.f32.mrf.mxu1 }
 0x591   :  { %v621_v47 = vpop.f32.mrf.mxu0  ;;  %v661_v48 = vpop.f32.mrf.mxu1 }
 0x593   :  { %v622_v49 = vpop.f32.mrf.mxu0  ;;  %v1272_v50 = vpop.f32.mrf.mxu1 }
 0x599   :  { %v761_v51 = vpop.f32.mrf.mxu0  ;;  %v802_v52 = vpop.f32.mrf.mxu1 }
 0x59a   :  { %v810_v53 = vmul.f32 %v802_v52, %v658_v44  ;;  %v808_v0 = vmul.f32 %v761_v51, %v617_v43 }
 0x59b   :  { %v763_v54 = vpop.f32.mrf.mxu0  ;;  %v1281_v55 = vpop.f32.mrf.mxu1 }
 0x59c   :  { %v813_v56 = vpack.c.bf16 %v810_v53, %v810_v53  ;;  %v809_v57 = vmul.f32 %v763_v54, %v619_v45  ;;  %v811_v61 = vpack.c.bf16 %v808_v0, %v808_v0 }
 0x59d   :  { %v765_v58 = vpop.f32.mrf.mxu0  ;;  %v805_v59 = vpop.f32.mrf.mxu1 }
 0x59e   :  { %v812_v60 = vpack.c.bf16 %v809_v57, %v809_v57  ;;  %1300 = vmatmul.mubr.bf16.vlgmr.msra.gmra.mxu1 %v813_v56 }
 0x59f   :  { %v766_v62 = vpop.f32.mrf.mxu0  ;;  %v1282_v63 = vpop.f32.mrf.mxu1 }
 0x5a0   :  { %1038 = vmatprep.mubr.bf16.mxu0 %v812_v60 }
 0x5a1   :  { %1039 = vmatmul.mubr.bf16.vlgmr.msra.gmra.mxu0 %v811_v61 }
 0x65e   :  { %v1080_v1 = vpop.f32.mrf.mxu1 }
 0x660   :  { %v1301_v2 = vpop.f32.mrf.mxu1 }
 0x661   :  { %v1206_v4 = vpop.f32.mrf.mxu0 }
 0x662   :  { %v1083_v5 = vpop.f32.mrf.mxu1 }
 0x663   :  { %v1207_v6 = vpop.f32.mrf.mxu0 }
 0x664   :  { %v1208_v7 = vadd.f32 %v1207_v6, %v1206_v4  ;;  %v1302_v8 = vpop.f32.mrf.mxu1 }
 0x665   :  { %v1209_v9 = vpop.f32.mrf.mxu0 }
 0x666   :  { %v1081_v10 = vadd.f32 %v1208_v7, %v1080_v1 }
 0x667   :  { %v1210_v11 = vpop.f32.mrf.mxu0 }
 0x668   :  { %1086 = vst [vmem:[#allocation11] sm:$0xff] %v1081_v10 }
 0x669   :  { %1494 = shalt.err (!%p1491_p1)
}
 0x66a   :  { %1096 = dma.vmem_to_hbm [thread:$0]  %s1094_s23, 128, %s1753_s13, [#allocation4]  }
 0x66b   :  { %1509 = dma.done.wait [#allocation4], 128  }
 0x66c   :  { %1510 = vsyncadd [#allocation4], 4294967168 }
 0x66d   :  { %1100 = vsyncpa [#allocation3], 1 }
 0x66e   :  { %1101 = vsyncpa [#allocation6], 1 }
 0x66f   :  { %1102 = vsyncpa [#allocation9], 1 }
 0x670   :  { %1103 = vsyncpa [#allocation4], 1 }

</bundles_post_ra>
